<compile_context>
chip_gen: v6e
topology: v6e:2x2x1
jax: 0.10.0
libtpu: 0.0.40
codegen_flags: <defaults>
</compile_context>

<pallas_src>
import jax
import jax.numpy as jnp
from jax import lax
from jax.experimental import pallas as pl
from jax.experimental.pallas import tpu as pltpu

_TILE_BUDGET_BYTES = 24 * 1024 * 1024  # pipeline buffers + temporaries per tile


def _round_up(v, m):
    return ((v + m - 1) // m) * m


def _tpu_limits():
    """(vmem_limit_bytes, num_tensorcores) for the current chip, defensively."""
    vmem_cap = 128 * 1024 * 1024      # v5e/v6e physical VMEM per TC
    num_cores = 1
    try:
        info = pltpu.get_tpu_info()
        cap = getattr(info, "vmem_capacity_bytes", None)
        if cap:
            vmem_cap = int(cap)
        for attr in ("num_tensorcores", "tensorcores_per_chip",
                     "num_cores", "core_count"):
            val = getattr(info, attr, None)
            if val:
                num_cores = int(val)
                break
        else:
            # heuristic: only v7x has <= 64 MiB VMEM per TC, and it has 2 TCs
            if vmem_cap <= 64 * 1024 * 1024:
                num_cores = 2
    except Exception:
        pass
    # scoped-VMEM request: ~70% of physical, never above 64 MiB
    # (v5e/v6e -> 64 MiB; v7x (64 MiB physical) -> ~44 MiB with headroom)
    vmem_limit = min(64 * 1024 * 1024, int(vmem_cap * 0.70))
    return vmem_limit, num_cores


def _choose_tile_batch(B, F, itemsize, vmem_limit, num_cores, needs_f32_temp):
    """Largest row-tile whose pipeline buffers + temporaries fit the budget."""
    # sublane packing granularity: 8 rows (f32), 16 (bf16), 32 (int8)
    pack = max(8, 32 // max(1, itemsize))
    f_pad = _round_up(F, 128)                      # lane padding counts too
    # 2 in-buffers + 2 out-buffers (double-buffered pipeline), plus one f32
    # tile for the upcast/accumulation intermediate for sub-32-bit inputs.
    bytes_per_row = 4 * f_pad * itemsize + (4 * f_pad if needs_f32_temp else 0)
    budget = min(_TILE_BUDGET_BYTES, vmem_limit // 2)
    # very long feature rows on big-VMEM chips (v5e/v6e): allow a bigger tile
    # so the ~0.35 us/step overhead stays amortized; never on v7x.
    if vmem_limit >= 56 * 1024 * 1024 and bytes_per_row > (1 << 20):
        budget = min(40 * 1024 * 1024, vmem_limit * 5 // 8)
    rows = max(pack, (budget // bytes_per_row) // pack * pack)
    if num_cores >= 2:
        # keep >= num_cores grid steps so the "parallel" batch axis can shard
        # across the chip's TensorCores (v7x); skip on 1-TC chips.
        per_core = max(pack, _round_up(pl.cdiv(B, num_cores), pack))
        rows = min(rows, per_core)
    rows = min(rows, _round_up(B, pack))
    return rows


def _make_kernel(power, dtype):
    native_scale = jnp.dtype(dtype).itemsize < 4   # bf16 / fp8 / int8 input
    if power == 2:
        def kernel(x_ref, o_ref):
            x = x_ref[...]
            xf = x.astype(jnp.float32)
            ss = jnp.sum(xf * xf, axis=-1, keepdims=True)   # (TB, 1) per row
            inv = lax.rsqrt(ss)                             # EUP, one per row
            if native_scale:
                # scale straight from the native-dtype tile; no full-tile f32
                # copy has to survive until the store (halves temp pressure).
                o_ref[...] = (x * inv.astype(x.dtype)).astype(o_ref.dtype)
            else:
                o_ref[...] = (xf * inv).astype(o_ref.dtype)
    else:
        def kernel(x_ref, o_ref):
            # Generic power path (matches the module literally: no abs()).
            # `power` is a Python scalar, so integer powers lower to repeated
            # VALU multiplies rather than exp/log on the single EUP slot.
            x = x_ref[...].astype(jnp.float32)
            s = jnp.sum(x ** power, axis=-1, keepdims=True)
            inv = s ** (-1.0 / power)          # per-row inverse norm (EUP)
            o_ref[...] = (x * inv).astype(o_ref.dtype)
    return kernel


def normalize(x, *, power=2, tile_batch=None):
    """p-norm normalize along axis 1 of a (batch, feat) array (PyTorch Normalize)."""
    B, F = x.shape
    itemsize = jnp.dtype(x.dtype).itemsize
    vmem_limit, num_cores = _tpu_limits()
    needs_f32_temp = (itemsize < 4) or (power != 2)
    if tile_batch is None:
        tile_batch = _choose_tile_batch(
            B, F, itemsize, vmem_limit, num_cores, needs_f32_temp)

    grid = (pl.cdiv(B, tile_batch),)  # tail tile is auto-padded; OOB rows dropped

    return pl.pallas_call(
        _make_kernel(power, x.dtype),
        out_shape=jax.ShapeDtypeStruct((B, F), x.dtype),
        grid=grid,
        in_specs=[pl.BlockSpec((tile_batch, F), lambda i: (i, 0))],
        out_specs=pl.BlockSpec((tile_batch, F), lambda i: (i, 0)),
        compiler_params=pltpu.CompilerParams(
            dimension_semantics=("parallel",),
            vmem_limit_bytes=vmem_limit,
        ),
    )(x)


def _ref(x, power=2):
    # pure-JAX mirror of the PyTorch forward
    xf = x.astype(jnp.float32)
    norm = jnp.sum(xf ** power, axis=1, keepdims=True) ** (1.0 / power)
    return (xf / norm).astype(x.dtype)


if __name__ == "__main__":
    key = jax.random.PRNGKey(0)

    # small shape consistent with a feature embedding: (batch, feat)
    x = jax.random.normal(key, (8, 256), dtype=jnp.float32)
    out = jax.block_until_ready(normalize(x))
    assert out.shape == x.shape and out.dtype == x.dtype
    assert jnp.allclose(out, _ref(x), atol=1e-5, rtol=1e-5)

    # non-divisible batch: exercises the padded tail-block path
    x2 = jax.random.normal(jax.random.PRNGKey(1), (12, 128), dtype=jnp.float32)
    out2 = jax.block_until_ready(normalize(x2, tile_batch=8))
    assert out2.shape == x2.shape
    assert jnp.allclose(out2, _ref(x2), atol=1e-5, rtol=1e-5)

    # bf16 input: exercises the native-dtype scaling path
    x3 = jax.random.normal(jax.random.PRNGKey(2), (16, 256), dtype=jnp.bfloat16)
    out3 = jax.block_until_ready(normalize(x3))
    assert out3.shape == x3.shape and out3.dtype == x3.dtype
    assert jnp.allclose(out3.astype(jnp.float32), _ref(x3).astype(jnp.float32),
                        atol=2e-2, rtol=2e-2)

    # generic (even integer) power path
    x4 = jax.random.normal(jax.random.PRNGKey(3), (8, 128), dtype=jnp.float32)
    out4 = jax.block_until_ready(normalize(x4, power=4))
    assert jnp.allclose(out4, _ref(x4, power=4), atol=1e-5, rtol=1e-4)

    print("KERNEL_OK")
</pallas_src>

<mosaic_0001>
module attributes {stable_mosaic.version = 11 : i64} {
  func.func @kernel(%arg0: i32, %arg1: memref<8x256xf32, #tpu.memory_space<vmem>>, %arg2: memref<8x256xf32, #tpu.memory_space<vmem>>) attributes {dimension_semantics = [#tpu.dimension_semantics<parallel>], iteration_bounds = array<i64: 1>, scalar_prefetch = 0 : i64, scratch_operands = 0 : i64, tpu.core_type = #tpu.core_type<tc>, window_params = [{transform_indices = @transform_0, window_bounds = array<i64: 8, 256>}, {transform_indices = @transform_1, window_bounds = array<i64: 8, 256>}]} {
    %c0 = arith.constant 0 : index
    %c0_0 = arith.constant 0 : index
    %0 = vector.load %arg1[%c0, %c0_0] : memref<8x256xf32, #tpu.memory_space<vmem>>, vector<8x256xf32>
    %1 = arith.mulf %0, %0 : vector<8x256xf32>
    %cst = arith.constant dense<0.000000e+00> : vector<8xf32>
    %2 = vector.multi_reduction <add>, %1, %cst [1] : vector<8x256xf32> to vector<8xf32>
    %3 = vector.shape_cast %2 : vector<8xf32> to vector<8x1xf32>
    %4 = math.rsqrt %3 : vector<8x1xf32>
    %5 = vector.broadcast %4 : vector<8x1xf32> to vector<8x256xf32>
    %6 = arith.mulf %0, %5 : vector<8x256xf32>
    %c0_1 = arith.constant 0 : index
    %c0_2 = arith.constant 0 : index
    %7 = vector.load %arg2[%c0_1, %c0_2] : memref<8x256xf32, #tpu.memory_space<vmem>>, vector<8x256xf32>
    tpu.vector_store %arg2[%c0_1, %c0_2], %6 {strides = array<i32>} : memref<8x256xf32, #tpu.memory_space<vmem>>, vector<8x256xf32>,
    return
  }
  func.func @transform_0(%arg0: i32) -> (i32, i32) {
    %c0_i32 = arith.constant 0 : i32
    %c0_i32_0 = arith.constant 0 : i32
    return %arg0, %c0_i32 : i32, i32
  }
  func.func @transform_1(%arg0: i32) -> (i32, i32) {
    %c0_i32 = arith.constant 0 : i32
    %c0_i32_0 = arith.constant 0 : i32
    return %arg0, %c0_i32 : i32, i32
  }
}

</mosaic_0001>

<bundles_post_ra>
// kernel: tpu_custom_call.1
= control target key start
LH: loop header
LB: loop body
LE: loop exit
PB: predicated region body
PF: predicated region fallthrough
CT: control target
= control target key end

     0   :  { %6 = vsyncpa [#allocation3], 0  ;;  %s114_s0 = inlined_call_operand.hbm [shape: f32[8,256], index: 0, kind: input, shape index: {}]   ;;  %s115_s1 = inlined_call_operand.hbm [shape: f32[8,256], index: 1, kind: output, shape index: {}]  }
   0x1   :  { %7 = vsyncpa [#allocation4], 0  ;;  %s96_s6 = smov [#allocation2]  }
   0x2   :  { %s14_s7 = sshll.u32 %s96_s6, 4  ;;  %s15_s7 = int_to_ptr.vmem [resolvable:$true] %s14_s7 }
   0x3   :  { %s60_s8 = scalar_lea.vmem %s15_s7, 256  ;;  %p65_p1 = scmp.lt.s32.totalorder %s15_s7, %s15_s7 }
   0x4   :  { %p61_p0 = scmp.ne.s32.totalorder %s15_s7, %s60_s8  ;;  %p66_p2 = scmp.lt.s32.totalorder %s60_s8, %s60_s8 }
   0x6   :  { %p67_p3 = por %p66_p2, %p65_p1 }
   0x8   :  { %p68_p4 = pnand %p67_p3, %p61_p0 }
   0xa   :  { %71 = shalt.err (!%p68_p4)
}
   0xb   :  { %17 = dma.hbm_to_vmem [thread:$0]  %s114_s0, 256, %s15_s7, [#allocation3]  }
   0xc   :  { %92 = dma.done.wait [#allocation3], 256  }
   0xd   :  { %93 = vsyncadd [#allocation3], 4294967040  ;;  %v21_v0 = vld [vmem:[#allocation2] sm:$0xff]  ;;  %v22_v1 = vld [vmem:[#allocation2 + $0x8] sm:$0xff]  ;;  %s97_s11 = smov [#allocation5]  }
   0xe   :  { %v23_v2 = vmul.f32 %v21_v0, %v21_v0  ;;  %v24_v3 = vmul.f32 %v22_v1, %v22_v1  ;;  %s39_s12 = sshll.u32 %s97_s11, 4  ;;  %s40_s12 = int_to_ptr.vmem [resolvable:$true] %s39_s12 }
   0xf   :  { %s72_s13 = scalar_lea.vmem %s40_s12, 256  ;;  %p77_p6 = scmp.lt.s32.totalorder %s40_s12, %s40_s12 }
  0x10   :  { %v25_v4 = vadd.f32 %v24_v3, %v23_v2  ;;  %p73_p5 = scmp.ne.s32.totalorder %s40_s12, %s72_s13  ;;  %p78_p7 = scmp.lt.s32.totalorder %s72_s13, %s72_s13 }
  0x12   :  { %26 = vadd.xlane.f32.xlu0 %v25_v4  ;;  %p79_p8 = por %p78_p7, %p77_p6 }
  0x14   :  { %p80_p9 = pnand %p79_p8, %p73_p5 }
  0x9b   :  { %v27_v5 = vpop.xlane.xlu0 %26 }
  0x9c   :  { %50 = vrsqrt.f32 %v27_v5 }
  0xa9   :  { %v51_v6 = vpop.eup %50 }
  0xaa   :  { %v29_v7 = vmul.f32 %v51_v6, %v21_v0  ;;  %v30_v8 = vmul.f32 %v51_v6, %v22_v1 }
  0xac   :  { %31 = vst [vmem:[#allocation5] sm:$0xff] %v29_v7  ;;  %32 = vst [vmem:[#allocation5 + $0x8] sm:$0xff] %v30_v8 }
  0xad   :  { %83 = shalt.err (!%p80_p9)
}
  0xae   :  { %42 = dma.vmem_to_hbm [thread:$0]  %s40_s12, 256, %s115_s1, [#allocation4]  }
  0xaf   :  { %94 = dma.done.wait [#allocation4], 256  }
  0xb0   :  { %95 = vsyncadd [#allocation4], 4294967040 }
  0xb1   :  { %46 = vsyncpa [#allocation3], 1 }
  0xb2   :  { %47 = vsyncpa [#allocation4], 1 }

</bundles_post_ra>
